<compile_context>
chip_gen: v5e
topology: v5e:2x2
jax: 0.10.0
libtpu: 0.0.40
codegen_flags: <defaults>
</compile_context>

<pallas_src>
import jax
import jax.numpy as jnp
from jax.experimental import pallas as pl
from jax.experimental.pallas import tpu as pltpu

H1 = 469
H2 = 290
LANE = 128
H1P = 512   # 469 padded to 4*128
H2P = 384   # 290 padded to 3*128


def _round_up(n, m):
    return ((n + m - 1) // m) * m


def _cdiv(a, b):
    return -(-a // b)


def dqn_kernel(x_ref, w1_ref, b1_ref, w2_ref, b2_ref, w3_ref, b3_ref, out_ref):
    # fc1 + relu   (bf16 MXU operands, f32 accumulation; the f32->bf16 cast of x is VPU
    # work that hides under the matmul push slots)
    x = x_ref[...].astype(jnp.bfloat16)
    h1 = jnp.dot(x, w1_ref[...], preferred_element_type=jnp.float32)
    h1 = jnp.maximum(h1 + b1_ref[...], 0.0).astype(jnp.bfloat16)
    # fc2 + relu
    h2 = jnp.dot(h1, w2_ref[...], preferred_element_type=jnp.float32)
    h2 = jnp.maximum(h2 + b2_ref[...], 0.0).astype(jnp.bfloat16)
    # output layer (no activation) -> lane-dense (TB, 128) bf16 slab (halved writeback)
    out = jnp.dot(h2, w3_ref[...], preferred_element_type=jnp.float32)
    out_ref[...] = (out + b3_ref[...]).astype(jnp.bfloat16)


def dqn_forward(x, params, *, tb=1024):
    """x: (B, state_size) f32; params from init_params(). Returns (B, action_size) f32."""
    w1, b1, w2, b2, w3, b3 = (params["w1"], params["b1"], params["w2"],
                              params["b2"], params["w3"], params["b3"])
    action_size = params["action_size"]
    B, S = x.shape
    AP = w3.shape[1]                       # padded action dim (multiple of 128)

    # ---- grid shaping ---------------------------------------------------------------
    steps = max(_cdiv(B, tb), 1)
    if steps == 1 and B > 16:
        steps = 2                          # use both v7x TensorCores; harmless on v5e/v6e
    TB = _round_up(_cdiv(B, steps), 16)    # batch tile, multiple of bf16 (16,128) sublane tile
    Bp = TB * steps                        # padding bounded by ~16 rows per step

    # Only zero-pad the batch axis (no dtype-cast copy through HBM).
    x_p = x if Bp == B else jnp.pad(x, ((0, Bp - B), (0, 0)))

    x_spec = pl.BlockSpec((TB, S), lambda i: (i, 0))
    out_spec = pl.BlockSpec((TB, AP), lambda i: (i, 0))

    def resident(arr):                     # whole array, same block every step -> stays in VMEM
        return pl.BlockSpec(arr.shape, lambda i: (0, 0))

    weight_bytes = sum(a.size * a.dtype.itemsize for a in (w1, b1, w2, b2, w3, b3))
    flops = 2 * Bp * (S * H1P + H1P * H2P + H2P * AP)
    bytes_accessed = (x_p.size * x_p.dtype.itemsize   # f32 input read
                      + Bp * AP * 2                    # bf16 output write
                      + weight_bytes)

    # Explicit VMEM budget: x (f32, 2 bufs) + out (bf16, 2 bufs) + resident weights (2 bufs,
    # conservative) + f32/bf16 h1/h2 intermediates, with headroom.  Clamped to [16, 64] MiB so
    # tb sweeps neither trip v5e's 16 MiB scoped default nor exceed v7x's 64 MiB physical VMEM.
    per_step = (2 * TB * S * 4 + 2 * TB * AP * 2
                + TB * (H1P + H2P) * 4 + TB * (H1P + H2P) * 2)
    vmem_bytes = int(1.5 * (2 * weight_bytes + per_step)) + (2 << 20)
    vmem_bytes = min(max(vmem_bytes, 16 << 20), 64 << 20)

    out = pl.pallas_call(
        dqn_kernel,
        out_shape=jax.ShapeDtypeStruct((Bp, AP), jnp.bfloat16),
        grid=(steps,),
        in_specs=[x_spec,
                  resident(w1), resident(b1),
                  resident(w2), resident(b2),
                  resident(w3), resident(b3)],
        out_specs=out_spec,
        compiler_params=pltpu.CompilerParams(
            dimension_semantics=("parallel",),
            vmem_limit_bytes=vmem_bytes),
        cost_estimate=pl.CostEstimate(flops=flops, transcendentals=0,
                                      bytes_accessed=bytes_accessed),
    )(x_p, w1, b1, w2, b2, w3, b3)

    return out[:B, :action_size].astype(jnp.float32)


def init_params(key, state_size, action_size):
    """nn.Linear-style U(-1/sqrt(fan_in), 1/sqrt(fan_in)) init, zero-padded to lane-aligned
    shapes and stored as (in, out). Weights bf16, biases f32."""
    def linear(k, fan_in, fan_out, fan_in_p, fan_out_p):
        kw, kb = jax.random.split(k)
        bound = 1.0 / jnp.sqrt(jnp.float32(fan_in))
        w = jax.random.uniform(kw, (fan_in, fan_out), jnp.float32, -bound, bound)
        b = jax.random.uniform(kb, (1, fan_out), jnp.float32, -bound, bound)
        w_p = jnp.zeros((fan_in_p, fan_out_p), jnp.float32).at[:fan_in, :fan_out].set(w)
        b_p = jnp.zeros((1, fan_out_p), jnp.float32).at[:, :fan_out].set(b)
        return w_p.astype(jnp.bfloat16), b_p

    AP = _round_up(action_size, LANE)
    k1, k2, k3 = jax.random.split(key, 3)
    w1, b1 = linear(k1, state_size, H1, state_size, H1P)
    w2, b2 = linear(k2, H1, H2, H1P, H2P)
    w3, b3 = linear(k3, H2, action_size, H2P, AP)
    return {"w1": w1, "b1": b1, "w2": w2, "b2": b2, "w3": w3, "b3": b3,
            "action_size": action_size}


def dqn_reference(x, p):
    """Pure-JAX reference mirroring the kernel's bf16 intermediate rounding in f32 math."""
    xb = x.astype(jnp.bfloat16).astype(jnp.float32)
    w1 = p["w1"].astype(jnp.float32)
    w2 = p["w2"].astype(jnp.float32)
    w3 = p["w3"].astype(jnp.float32)
    h1 = jnp.maximum(xb @ w1 + p["b1"], 0.0)
    h1 = h1.astype(jnp.bfloat16).astype(jnp.float32)
    h2 = jnp.maximum(h1 @ w2 + p["b2"], 0.0)
    h2 = h2.astype(jnp.bfloat16).astype(jnp.float32)
    out = h2 @ w3 + p["b3"]
    return out[:, :p["action_size"]]


if __name__ == "__main__":
    batch = 2
    state_size = 32
    action_size = 4

    key = jax.random.PRNGKey(0)
    kx, kp = jax.random.split(key)
    x = jax.random.normal(kx, (batch, state_size), jnp.float32)
    params = init_params(kp, state_size, action_size)

    out = jax.block_until_ready(dqn_forward(x, params))
    ref = dqn_reference(x, params)
    assert out.shape == (batch, action_size)
    assert jnp.allclose(out, ref, atol=2e-2, rtol=2e-2)

    # Exercise the forced-2-step path (B > 16 but smaller than one tile) -> grid=(2,).
    xm = jax.random.normal(jax.random.PRNGKey(2), (200, state_size), jnp.float32)
    outm = jax.block_until_ready(dqn_forward(xm, params))
    refm = dqn_reference(xm, params)
    assert outm.shape == (200, action_size)
    assert jnp.allclose(outm, refm, atol=2e-2, rtol=2e-2)

    # Exercise the multi-tile, weight-resident path with a non-multiple batch size.
    xb = jax.random.normal(jax.random.PRNGKey(1), (1000, state_size), jnp.float32)
    outb = jax.block_until_ready(dqn_forward(xb, params, tb=256))
    refb = dqn_reference(xb, params)
    assert outb.shape == (1000, action_size)
    assert jnp.allclose(outb, refb, atol=2e-2, rtol=2e-2)

    print("KERNEL_OK")
</pallas_src>

<mosaic_0001>
module attributes {stable_mosaic.version = 11 : i64} {
  func.func @dqn_kernel(%arg0: i32, %arg1: memref<16x32xf32, #tpu.memory_space<vmem>>, %arg2: memref<32x512xbf16, #tpu.memory_space<vmem>>, %arg3: memref<1x512xf32, #tpu.memory_space<vmem>>, %arg4: memref<512x384xbf16, #tpu.memory_space<vmem>>, %arg5: memref<1x384xf32, #tpu.memory_space<vmem>>, %arg6: memref<384x128xbf16, #tpu.memory_space<vmem>>, %arg7: memref<1x128xf32, #tpu.memory_space<vmem>>, %arg8: memref<16x128xbf16, #tpu.memory_space<vmem>>) attributes {dimension_semantics = [#tpu.dimension_semantics<parallel>], iteration_bounds = array<i64: 1>, scalar_prefetch = 0 : i64, scratch_operands = 0 : i64, tpu.core_type = #tpu.core_type<tc>, window_params = [{transform_indices = @transform_0, window_bounds = array<i64: 16, 32>}, {pipeline_mode = #tpu.pipeline_mode<synchronous>, transform_indices = @transform_1, window_bounds = array<i64: 32, 512>}, {pipeline_mode = #tpu.pipeline_mode<synchronous>, transform_indices = @transform_2, window_bounds = array<i64: 1, 512>}, {pipeline_mode = #tpu.pipeline_mode<synchronous>, transform_indices = @transform_3, window_bounds = array<i64: 512, 384>}, {pipeline_mode = #tpu.pipeline_mode<synchronous>, transform_indices = @transform_4, window_bounds = array<i64: 1, 384>}, {pipeline_mode = #tpu.pipeline_mode<synchronous>, transform_indices = @transform_5, window_bounds = array<i64: 384, 128>}, {pipeline_mode = #tpu.pipeline_mode<synchronous>, transform_indices = @transform_6, window_bounds = array<i64: 1, 128>}, {transform_indices = @transform_7, window_bounds = array<i64: 16, 128>}]} {
    %c0 = arith.constant 0 : index
    %c0_0 = arith.constant 0 : index
    %0 = vector.load %arg1[%c0, %c0_0] : memref<16x32xf32, #tpu.memory_space<vmem>>, vector<16x32xf32>
    %1 = arith.truncf %0 : vector<16x32xf32> to vector<16x32xbf16>
    %c0_1 = arith.constant 0 : index
    %c0_2 = arith.constant 0 : index
    %2 = vector.load %arg2[%c0_1, %c0_2] : memref<32x512xbf16, #tpu.memory_space<vmem>>, vector<32x512xbf16>
    %cst = arith.constant dense<0.000000e+00> : vector<16x512xf32>
    %3 = tpu.matmul %1, %2, %cst {dimension_numbers = #tpu.dot_dimension_numbers<[1], [0], [0], [1], [0, 0, 1, 1], [], []>} : vector<16x32xbf16>, vector<32x512xbf16>, vector<16x512xf32> -> vector<16x512xf32>
    %c0_3 = arith.constant 0 : index
    %c0_4 = arith.constant 0 : index
    %4 = vector.load %arg3[%c0_3, %c0_4] : memref<1x512xf32, #tpu.memory_space<vmem>>, vector<1x512xf32>
    %5 = vector.broadcast %4 : vector<1x512xf32> to vector<16x512xf32>
    %6 = arith.addf %3, %5 : vector<16x512xf32>
    %cst_5 = arith.constant 0.000000e+00 : f32
    %7 = vector.broadcast %cst_5 : f32 to vector<16x512xf32>
    %8 = arith.maximumf %6, %7 : vector<16x512xf32>
    %9 = arith.truncf %8 : vector<16x512xf32> to vector<16x512xbf16>
    %c0_6 = arith.constant 0 : index
    %c0_7 = arith.constant 0 : index
    %10 = vector.load %arg4[%c0_6, %c0_7] : memref<512x384xbf16, #tpu.memory_space<vmem>>, vector<512x384xbf16>
    %cst_8 = arith.constant dense<0.000000e+00> : vector<16x384xf32>
    %11 = tpu.matmul %9, %10, %cst_8 {dimension_numbers = #tpu.dot_dimension_numbers<[1], [0], [0], [1], [0, 0, 1, 1], [], []>} : vector<16x512xbf16>, vector<512x384xbf16>, vector<16x384xf32> -> vector<16x384xf32>
    %c0_9 = arith.constant 0 : index
    %c0_10 = arith.constant 0 : index
    %12 = vector.load %arg5[%c0_9, %c0_10] : memref<1x384xf32, #tpu.memory_space<vmem>>, vector<1x384xf32>
    %13 = vector.broadcast %12 : vector<1x384xf32> to vector<16x384xf32>
    %14 = arith.addf %11, %13 : vector<16x384xf32>
    %cst_11 = arith.constant 0.000000e+00 : f32
    %15 = vector.broadcast %cst_11 : f32 to vector<16x384xf32>
    %16 = arith.maximumf %14, %15 : vector<16x384xf32>
    %17 = arith.truncf %16 : vector<16x384xf32> to vector<16x384xbf16>
    %c0_12 = arith.constant 0 : index
    %c0_13 = arith.constant 0 : index
    %18 = vector.load %arg6[%c0_12, %c0_13] : memref<384x128xbf16, #tpu.memory_space<vmem>>, vector<384x128xbf16>
    %cst_14 = arith.constant dense<0.000000e+00> : vector<16x128xf32>
    %19 = tpu.matmul %17, %18, %cst_14 {dimension_numbers = #tpu.dot_dimension_numbers<[1], [0], [0], [1], [0, 0, 1, 1], [], []>} : vector<16x384xbf16>, vector<384x128xbf16>, vector<16x128xf32> -> vector<16x128xf32>
    %c0_15 = arith.constant 0 : index
    %c0_16 = arith.constant 0 : index
    %20 = vector.load %arg7[%c0_15, %c0_16] : memref<1x128xf32, #tpu.memory_space<vmem>>, vector<1x128xf32>
    %21 = vector.broadcast %20 : vector<1x128xf32> to vector<16x128xf32>
    %22 = arith.addf %19, %21 : vector<16x128xf32>
    %23 = arith.truncf %22 : vector<16x128xf32> to vector<16x128xbf16>
    %c0_17 = arith.constant 0 : index
    %c0_18 = arith.constant 0 : index
    %24 = vector.load %arg8[%c0_17, %c0_18] : memref<16x128xbf16, #tpu.memory_space<vmem>>, vector<16x128xbf16>
    tpu.vector_store %arg8[%c0_17, %c0_18], %23 {strides = array<i32>} : memref<16x128xbf16, #tpu.memory_space<vmem>>, vector<16x128xbf16>,
    return
  }
  func.func @transform_0(%arg0: i32) -> (i32, i32) {
    %c0_i32 = arith.constant 0 : i32
    %c0_i32_0 = arith.constant 0 : i32
    return %arg0, %c0_i32 : i32, i32
  }
  func.func @transform_1(%arg0: i32) -> (i32, i32) {
    %c0_i32 = arith.constant 0 : i32
    %c0_i32_0 = arith.constant 0 : i32
    %c0_i32_1 = arith.constant 0 : i32
    return %c0_i32, %c0_i32_0 : i32, i32
  }
  func.func @transform_2(%arg0: i32) -> (i32, i32) {
    %c0_i32 = arith.constant 0 : i32
    %c0_i32_0 = arith.constant 0 : i32
    %c0_i32_1 = arith.constant 0 : i32
    return %c0_i32, %c0_i32_0 : i32, i32
  }
  func.func @transform_3(%arg0: i32) -> (i32, i32) {
    %c0_i32 = arith.constant 0 : i32
    %c0_i32_0 = arith.constant 0 : i32
    %c0_i32_1 = arith.constant 0 : i32
    return %c0_i32, %c0_i32_0 : i32, i32
  }
  func.func @transform_4(%arg0: i32) -> (i32, i32) {
    %c0_i32 = arith.constant 0 : i32
    %c0_i32_0 = arith.constant 0 : i32
    %c0_i32_1 = arith.constant 0 : i32
    return %c0_i32, %c0_i32_0 : i32, i32
  }
  func.func @transform_5(%arg0: i32) -> (i32, i32) {
    %c0_i32 = arith.constant 0 : i32
    %c0_i32_0 = arith.constant 0 : i32
    %c0_i32_1 = arith.constant 0 : i32
    return %c0_i32, %c0_i32_0 : i32, i32
  }
  func.func @transform_6(%arg0: i32) -> (i32, i32) {
    %c0_i32 = arith.constant 0 : i32
    %c0_i32_0 = arith.constant 0 : i32
    %c0_i32_1 = arith.constant 0 : i32
    return %c0_i32, %c0_i32_0 : i32, i32
  }
  func.func @transform_7(%arg0: i32) -> (i32, i32) {
    %c0_i32 = arith.constant 0 : i32
    %c0_i32_0 = arith.constant 0 : i32
    return %arg0, %c0_i32 : i32, i32
  }
}

</mosaic_0001>

<bundles_post_ra>
// kernel: tpu_custom_call.1
= control target key start
LH: loop header
LB: loop body
LE: loop exit
PB: predicated region body
PF: predicated region fallthrough
CT: control target
= control target key end

     0   :  { %12 = vsyncpa [#allocation3], 0  ;;  %s2266_s0 = inlined_call_operand.hbm [shape: f32[16,32], index: 0, kind: input, shape index: {}]   ;;  %s2267_s1 = inlined_call_operand.hbm [shape: bf16[32,512], index: 1, kind: input, shape index: {}]   ;;  %s2268_s2 = inlined_call_operand.hbm [shape: f32[1,512], index: 2, kind: input, shape index: {}]   ;;  %s2269_s3 = inlined_call_operand.hbm [shape: bf16[512,384], index: 3, kind: input, shape index: {}]   ;;  %s2270_s4 = inlined_call_operand.vmem [shape: f32[1,384], index: 4, kind: input, shape index: {}]   ;;  %s2271_s5 = inlined_call_operand.hbm [shape: bf16[384,128], index: 5, kind: input, shape index: {}]   ;;  %s2272_s6 = inlined_call_operand.vmem [shape: f32[1,128], index: 6, kind: input, shape index: {}]   ;;  %s2273_s7 = inlined_call_operand.hbm [shape: bf16[16,128], index: 7, kind: output, shape index: {}]  }
   0x1   :  { %13 = vsyncpa [#allocation6], 0 }
   0x2   :  { %14 = vsyncpa [#allocation9], 0  ;;  %s33_s26 = sshll.u32 %s2267_s1, 4  ;;  %s34_s26 = int_to_ptr.hbm [resolvable:$true] %s33_s26 }
   0x3   :  { %15 = vsyncpa [#allocation4], 0  ;;  %s2141_s27 = smov [#allocation5]   ;;  %s57_s8 = sshll.u32 %s2269_s3, 4  ;;  %s58_s8 = int_to_ptr.hbm [resolvable:$true] %s57_s8 }
   0x4   :  { %s35_s28 = sshll.u32 %s2141_s27, 4  ;;  %s2142_s9 = smov 256   ;;  %s36_s28 = int_to_ptr.vmem [resolvable:$true] %s35_s28 }
   0x5   :  { %s2143_s10 = smov 16   ;;  %s2144_s11 = smov [#allocation8]  }
   0x6   :  { %41 = dma.hbm_to_vmem [thread:$0]  %s34_s26, 1024, %s36_s28, [#allocation6], %s2142_s9, %s2142_s9, %s2143_s10  }
   0x7   :  { %s59_s12 = sshll.u32 %s2144_s11, 4  ;;  %s2145_s13 = smov 192   ;;  %s60_s12 = int_to_ptr.vmem [resolvable:$true] %s59_s12 }
   0x8   :  { %s2146_s14 = smov 12   ;;  %s20_s16 = sshll.u32 %s2266_s0, 4  ;;  %s21_s16 = int_to_ptr.hbm [resolvable:$true] %s20_s16 }
   0x9   :  { %65 = dma.hbm_to_vmem [thread:$0]  %s58_s8, 12288, %s60_s12, [#allocation9], %s2145_s13, %s2145_s13, %s2146_s14  }
   0xa   :  { %s2147_s17 = smov [#allocation2]   ;;  %s47_s20 = sshll.u32 %s2268_s2, 4  ;;  %s48_s20 = int_to_ptr.hbm [resolvable:$true] %s47_s20 }
   0xb   :  { %s22_s18 = sshll.u32 %s2147_s17, 4  ;;  %s2148_s21 = smov 128   ;;  %s23_s18 = int_to_ptr.vmem [resolvable:$true] %s22_s18 }
   0xc   :  { %s2149_s22 = smov 8   ;;  %s2150_s23 = smov [#allocation7]  }
   0xd   :  { %28 = dma.hbm_to_vmem [thread:$0]  %s21_s16, 256, %s23_s18, [#allocation3], %s2148_s21, %s2148_s21, %s2149_s22  }
   0xe   :  { %s49_s24 = sshll.u32 %s2150_s23, 4  ;;  %s72_s27 = sshll.u32 %s2271_s5, 4  ;;  %s50_s24 = int_to_ptr.vmem [resolvable:$true] %s49_s24  ;;  %s73_s27 = int_to_ptr.hbm [resolvable:$true] %s72_s27 }
   0xf   :  { %52 = dma.hbm_to_vmem [thread:$0]  %s48_s20, 64, %s50_s24, [#allocation6]  }
  0x10   :  { %s2151_s0 = smov [#allocation10]   ;;  %s2152_s29 = smov 64  }
  0x11   :  { %s74_s28 = sshll.u32 %s2151_s0, 4  ;;  %s2153_s30 = smov 4   ;;  %s75_s28 = int_to_ptr.vmem [resolvable:$true] %s74_s28 }
  0x12   :  { %80 = dma.hbm_to_vmem [thread:$0]  %s73_s27, 3072, %s75_s28, [#allocation9], %s2152_s29, %s2152_s29, %s2153_s30  }
  0x13   :  { %2133 = dma.done.wait [#allocation3], 256  }
  0x14   :  { %2134 = vsyncadd [#allocation3], 4294967040 }
  0x15   :  { %2135 = dma.done.wait [#allocation6], 1088  }
  0x16   :  { %2136 = vsyncadd [#allocation6], 4294966208 }
  0x17   :  { %2137 = dma.done.wait [#allocation9], 15360  }
  0x18   :  { %2138 = vsyncadd [#allocation9], 4294951936  ;;  %v1343_v0 = vld [vmem:[#allocation5 + $0x20] sm:$0xf]  ;;  %v1847_v1 = vld [vmem:[#allocation5 + $0x2c] sm:$0xf0] }
  0x19   :  { %v1845_v2 = vld [vmem:[#allocation5 + $0x24] sm:$0xf]  ;;  %v1344_v3 = vor.u32 %v1847_v1, %v1343_v0  ;;  %v1345_v4 = vld [vmem:[#allocation5 + $0x30] sm:$0xf0]  ;;  %v1351_v5 = vld [vmem:[#allocation5 + $0x28] sm:$0xf] }
  0x1a   :  { %v1848_v6 = vld [vmem:[#allocation5 + $0x34] sm:$0xf0]  ;;  %v1348_v7 = vor.u32 %v1845_v2, %v1345_v4  ;;  %v1327_v9 = vld [vmem:[#allocation5] sm:$0xf]  ;;  %v1843_v10 = vld [vmem:[#allocation5 + $0xc] sm:$0xf0] }
  0x1b   :  { %v1352_v8 = vor.u32 %v1848_v6, %v1351_v5  ;;  %v1841_v11 = vld [vmem:[#allocation5 + $0x4] sm:$0xf]  ;;  %175 = vmatpush.bf16.msra.mxu3 %v1344_v3  ;;  %v1328_v12 = vor.u32 %v1843_v10, %v1327_v9  ;;  %v1329_v13 = vld [vmem:[#allocation5 + $0x10] sm:$0xf0]  ;;  %v1335_v14 = vld [vmem:[#allocation5 + $0x8] sm:$0xf] }
  0x1c   :  { %v1844_v15 = vld [vmem:[#allocation5 + $0x14] sm:$0xf0]  ;;  %189 = vmatpush.bf16.msra.mxu1 %v1348_v7  ;;  %v1332_v16 = vor.u32 %v1841_v11, %v1329_v13  ;;  %v104_v18 = vld [vmem:[#allocation2] sm:$0xff]  ;;  %vm165_vm0 = vcmask 261120   ;;  %v1846_v20 = vld [vmem:[#allocation5 + $0x2c] sm:$0xf] }
  0x1d   :  { %203 = vmatpush.bf16.msra.mxu2 %v1352_v8  ;;  %v1336_v17 = vor.u32 %v1844_v15, %v1335_v14  ;;  %v105_v19 = vld [vmem:[#allocation2 + $0x8] sm:$0xff]  ;;  %v1842_v22 = vld [vmem:[#allocation5 + $0xc] sm:$0xf]  ;;  %v1531_v28 = vld [vmem:[#allocation8 + $0x150] sm:$0xf]  ;;  %s2154_s9 = smov [#allocation11]  }
  0x1e   :  { %v1353_v21 = vld [vmem:[#allocation5 + $0x38] sm:$0xf0]  ;;  %v2213_v24 = vpack.c.bf16 %v105_v19, %v104_v18  ;;  %v1543_v26 = vld [vmem:[#allocation8 + $0x168] sm:$0xf]  ;;  %v1895_v27 = vld [vmem:[#allocation8 + $0x170] sm:$0xf0] }
  0x1f   :  { %v1337_v23 = vld [vmem:[#allocation5 + $0x18] sm:$0xf0]  ;;  %v1356_v25 = vor.u32 %v1846_v20, %v1353_v21  ;;  %176 = vmatpush.bf16.msra.mxu3 %v1328_v12  ;;  %v1544_v29 = vor.u32 %v1895_v27, %v1543_v26  ;;  %v1892_v30 = vld [vmem:[#allocation8 + $0x158] sm:$0xf0]  ;;  %v1447_v31 = vld [vmem:[#allocation8 + $0xa8] sm:$0xf] }
  0x20   :  { %v1871_v32 = vld [vmem:[#allocation8 + $0xb0] sm:$0xf0]  ;;  %190 = vmatpush.bf16.msra.mxu1 %v1332_v16  ;;  %v1639_v34 = vld [vmem:[#allocation8 + $0x228] sm:$0xf]  ;;  %v1340_v36 = vor.u32 %v1842_v22, %v1337_v23  ;;  %v1532_v37 = vor.u32 %v1892_v30, %v1531_v28  ;;  %v1519_v39 = vld [vmem:[#allocation8 + $0x138] sm:$0xf] }
  0x21   :  { %204 = vmatpush.bf16.msra.mxu2 %v1336_v17  ;;  %v1448_v33 = vor.u32 %v1871_v32, %v1447_v31  ;;  %v1919_v35 = vld [vmem:[#allocation8 + $0x230] sm:$0xf0]  ;;  %v1435_v40 = vld [vmem:[#allocation8 + $0x90] sm:$0xf]  ;;  %v1868_v41 = vld [vmem:[#allocation8 + $0x98] sm:$0xf0] }
  0x22   :  { %v1640_v38 = vor.u32 %v1919_v35, %v1639_v34  ;;  %1357 = vmatmul.msk.bf16.vlgmr.msra.gmra.mxu3 %vm165_vm0, %v2213_v24  ;;  %v1889_v42 = vld [vmem:[#allocation8 + $0x140] sm:$0xf0]  ;;  %v1436_v43 = vor.u32 %v1868_v41, %v1435_v40  ;;  %v1627_v44 = vld [vmem:[#allocation8 + $0x210] sm:$0xf]  ;;  %v1916_v45 = vld [vmem:[#allocation8 + $0x218] sm:$0xf0] }
  0x23   :  { %217 = vmatpush.bf16.msrb.mxu3 %v1356_v25  ;;  %885 = vmatpush.bf16.msra.mxu0 %v1448_v33  ;;  %v1423_v46 = vld [vmem:[#allocation8 + $0x78] sm:$0xf]  ;;  %v1865_v47 = vld [vmem:[#allocation8 + $0x80] sm:$0xf0]  ;;  %v1628_v48 = vor.u32 %v1916_v45, %v1627_v44  ;;  %v1520_v49 = vor.u32 %v1889_v42, %v1519_v39  ;;  %v1507_v52 = vld [vmem:[#allocation8 + $0x120] sm:$0xf] }
  0x24   :  { %899 = vmatpush.bf16.msrb.mxu1 %v1544_v29  ;;  %1359 = vmatmul.msk.bf16.vlgmr.msra.gmra.mxu2 %vm165_vm0, %v2213_v24  ;;  %v1615_v50 = vld [vmem:[#allocation8 + $0x1f8] sm:$0xf]  ;;  %v1913_v51 = vld [vmem:[#allocation8 + $0x200] sm:$0xf0]  ;;  %v1886_v53 = vld [vmem:[#allocation8 + $0x128] sm:$0xf0]  ;;  %v1424_v54 = vor.u32 %v1865_v47, %v1423_v46 }
  0x25   :  { %1358 = vmatmul.msk.bf16.vlgmr.msra.gmra.mxu1 %vm165_vm0, %v2213_v24  ;;  %913 = vmatpush.bf16.msrb.mxu2 %v1640_v38  ;;  %v1411_v55 = vld [vmem:[#allocation8 + $0x60] sm:$0xf]  ;;  %v1862_v56 = vld [vmem:[#allocation8 + $0x68] sm:$0xf0]  ;;  %v1616_v57 = vor.u32 %v1913_v51, %v1615_v50  ;;  %v1735_v58 = vld [vmem:[#allocation8 + $0x2e8] sm:$0xf]  ;;  %v1508_v59 = vor.u32 %v1886_v53, %v1507_v52 }
  0x26   :  { %v1603_v60 = vld [vmem:[#allocation8 + $0x1e0] sm:$0xf]  ;;  %v1910_v61 = vld [vmem:[#allocation8 + $0x1e8] sm:$0xf0]  ;;  %v1943_v62 = vld [vmem:[#allocation8 + $0x2f0] sm:$0xf0]  ;;  %v1412_v1 = vor.u32 %v1862_v56, %v1411_v55 }
  0x27   :  { %218 = vmatpush.bf16.msrb.mxu3 %v1340_v36  ;;  %886 = vmatpush.bf16.msra.mxu0 %v1436_v43  ;;  %v1495_v63 = vld [vmem:[#allocation8 + $0x108] sm:$0xf]  ;;  %v1883_v0 = vld [vmem:[#allocation8 + $0x110] sm:$0xf0]  ;;  %v1736_v3 = vor.u32 %v1943_v62, %v1735_v58  ;;  %v1723_v5 = vld [vmem:[#allocation8 + $0x2d0] sm:$0xf]  ;;  %v1604_v7 = vor.u32 %v1910_v61, %v1603_v60 }
  0x28   :  { %900 = vmatpush.bf16.msrb.mxu1 %v1532_v37  ;;  %v1399_v2 = vld [vmem:[#allocation8 + $0x48] sm:$0xf]  ;;  %v1859_v4 = vld [vmem:[#allocation8 + $0x50] sm:$0xf0]  ;;  %v1940_v6 = vld [vmem:[#allocation8 + $0x2d8] sm:$0xf0]  ;;  %v1496_v9 = vor.u32 %v1883_v0, %v1495_v63 }
  0x29   :  { %914 = vmatpush.bf16.msrb.mxu2 %v1628_v48  ;;  %v1724_v8 = vor.u32 %v1940_v6, %v1723_v5  ;;  %v1591_v10 = vld [vmem:[#allocation8 + $0x1c8] sm:$0xf]  ;;  %v1907_v11 = vld [vmem:[#allocation8 + $0x1d0] sm:$0xf0]  ;;  %v1483_v12 = vld [vmem:[#allocation8 + $0xf0] sm:$0xf]  ;;  %v1400_v14 = vor.u32 %v1859_v4, %v1399_v2 }
  0x2a   :  { %v1880_v13 = vld [vmem:[#allocation8 + $0xf8] sm:$0xf0]  ;;  %v1711_v15 = vld [vmem:[#allocation8 + $0x2b8] sm:$0xf]  ;;  %v1387_v16 = vld [vmem:[#allocation8 + $0x30] sm:$0xf]  ;;  %v1592_v19 = vor.u32 %v1907_v11, %v1591_v10 }
  0x2b   :  { %887 = vmatpush.bf16.msra.mxu0 %v1424_v54  ;;  %927 = vmatpush.bf16.msra.mxu3 %v1736_v3  ;;  %v1856_v17 = vld [vmem:[#allocation8 + $0x38] sm:$0xf0]  ;;  %v1937_v18 = vld [vmem:[#allocation8 + $0x2c0] sm:$0xf0]  ;;  %v1579_v20 = vld [vmem:[#allocation8 + $0x1b0] sm:$0xf]  ;;  %v1484_v22 = vor.u32 %v1880_v13, %v1483_v12 }
  0x2c   :  { %901 = vmatpush.bf16.msrb.mxu1 %v1520_v49  ;;  %v1712_v21 = vor.u32 %v1937_v18, %v1711_v15  ;;  %v1904_v23 = vld [vmem:[#allocation8 + $0x1b8] sm:$0xf0]  ;;  %v1699_v25 = vld [vmem:[#allocation8 + $0x2a0] sm:$0xf]  ;;  %v1934_v26 = vld [vmem:[#allocation8 + $0x2a8] sm:$0xf0]  ;;  %v1388_v29 = vor.u32 %v1856_v17, %v1387_v16 }
  0x2d   :  { %915 = vmatpush.bf16.msrb.mxu2 %v1616_v57  ;;  %v1471_v27 = vld [vmem:[#allocation8 + $0xd8] sm:$0xf]  ;;  %v1877_v28 = vld [vmem:[#allocation8 + $0xe0] sm:$0xf0]  ;;  %v1580_v32 = vor.u32 %v1904_v23, %v1579_v20  ;;  %v1459_v33 = vld [vmem:[#allocation8 + $0xc0] sm:$0xf]  ;;  %v1700_v35 = vor.u32 %v1934_v26, %v1699_v25 }
  0x2e   :  { %v1375_v30 = vld [vmem:[#allocation8 + $0x18] sm:$0xf]  ;;  %v1853_v31 = vld [vmem:[#allocation8 + $0x20] sm:$0xf0]  ;;  %v1472_v36 = vor.u32 %v1877_v28, %v1471_v27  ;;  %v1687_v38 = vld [vmem:[#allocation8 + $0x288] sm:$0xf] }
  0x2f   :  { %888 = vmatpush.bf16.msra.mxu0 %v1412_v1  ;;  %928 = vmatpush.bf16.msra.mxu3 %v1724_v8  ;;  %v1567_v34 = vld [vmem:[#allocation8 + $0x198] sm:$0xf]  ;;  %v1901_v37 = vld [vmem:[#allocation8 + $0x1a0] sm:$0xf0]  ;;  %v1931_v39 = vld [vmem:[#allocation8 + $0x290] sm:$0xf0]  ;;  %v1376_v42 = vor.u32 %v1853_v31, %v1375_v30 }
  0x30   :  { %902 = vmatpush.bf16.msrb.mxu1 %v1508_v59  ;;  %v1874_v40 = vld [vmem:[#allocation8 + $0xc8] sm:$0xf0]  ;;  %v1545_v41 = vld [vmem:[#allocation8 + $0x174] sm:$0xf0]  ;;  %v1363_v43 = vld [vmem:[#allocation8] sm:$0xf]  ;;  %v1568_v45 = vor.u32 %v1901_v37, %v1567_v34  ;;  %v1688_v48 = vor.u32 %v1931_v39, %v1687_v38 }
  0x31   :  { %916 = vmatpush.bf16.msrb.mxu2 %v1604_v7  ;;  %v1850_v44 = vld [vmem:[#allocation8 + $0x8] sm:$0xf0]  ;;  %v1449_v47 = vld [vmem:[#allocation8 + $0xb4] sm:$0xf0]  ;;  %v1460_v49 = vor.u32 %v1874_v40, %v1459_v33  ;;  %v1555_v50 = vld [vmem:[#allocation8 + $0x180] sm:$0xf] }
  0x32   :  { %1360 = vmatmul.msk.bf16.vlgmr.msrb.gmra.mxu3 %vm165_vm0, %v2213_v24  ;;  %v1894_v24 = vld [vmem:[#allocation8 + $0x16c] sm:$0xf]  ;;  %v1364_v53 = vor.u32 %v1850_v44, %v1363_v43  ;;  %v1641_v55 = vld [vmem:[#allocation8 + $0x234] sm:$0xf0]  ;;  %v1891_v56 = vld [vmem:[#allocation8 + $0x154] sm:$0xf] }
  0x33   :  { %889 = vmatpush.bf16.msra.mxu0 %v1400_v14  ;;  %929 = vmatpush.bf16.msra.mxu3 %v1712_v21  ;;  %v1870_v46 = vld [vmem:[#allocation8 + $0xac] sm:$0xf]  ;;  %v1548_v52 = vor.u32 %v1894_v24, %v1545_v41  ;;  %v1533_v57 = vld [vmem:[#allocation8 + $0x15c] sm:$0xf0]  ;;  %v1867_v60 = vld [vmem:[#allocation8 + $0x94] sm:$0xf] }
  0x34   :  { %903 = vmatpush.bf16.msrb.mxu1 %v1496_v9  ;;  %v1898_v51 = vld [vmem:[#allocation8 + $0x188] sm:$0xf0]  ;;  %v1452_v58 = vor.u32 %v1870_v46, %v1449_v47  ;;  %v1437_v61 = vld [vmem:[#allocation8 + $0x9c] sm:$0xf0]  ;;  %v1536_v63 = vor.u32 %v1891_v56, %v1533_v57  ;;  %v1915_v0 = vld [vmem:[#allocation8 + $0x214] sm:$0xf] }
  0x35   :  { %917 = vmatpush.bf16.msrb.mxu2 %v1592_v19  ;;  %v1918_v54 = vld [vmem:[#allocation8 + $0x22c] sm:$0xf]  ;;  %v1556_v59 = vor.u32 %v1898_v51, %v1555_v50  ;;  %v1629_v1 = vld [vmem:[#allocation8 + $0x21c] sm:$0xf0]  ;;  %v1888_v2 = vld [vmem:[#allocation8 + $0x13c] sm:$0xf]  ;;  %v1440_v4 = vor.u32 %v1867_v60, %v1437_v61 }
  0x36   :  { %v1644_v62 = vor.u32 %v1918_v54, %v1641_v55  ;;  %v1521_v3 = vld [vmem:[#allocation8 + $0x144] sm:$0xf0]  ;;  %v1632_v5 = vor.u32 %v1915_v0, %v1629_v1  ;;  %v1885_v7 = vld [vmem:[#allocation8 + $0x124] sm:$0xf]  ;;  %v1509_v8 = vld [vmem:[#allocation8 + $0x12c] sm:$0xf0] }
  0x37   :  { %890 = vmatpush.bf16.msra.mxu0 %v1388_v29  ;;  %930 = vmatpush.bf16.msra.mxu3 %v1700_v35  ;;  %v1524_v6 = vor.u32 %v1888_v2, %v1521_v3  ;;  %v1512_v9 = vor.u32 %v1885_v7, %v1509_v8  ;;  %v1675_v10 = vld [vmem:[#allocation8 + $0x270] sm:$0xf]  ;;  %v1928_v11 = vld [vmem:[#allocation8 + $0x278] sm:$0xf0]  ;;  %v1425_v14 = vld [vmem:[#allocation8 + $0x84] sm:$0xf0] }
  0x38   :  { %904 = vmatpush.bf16.msrb.mxu1 %v1484_v22  ;;  %v1676_v12 = vor.u32 %v1928_v11, %v1675_v10  ;;  %v1864_v13 = vld [vmem:[#allocation8 + $0x7c] sm:$0xf]  ;;  %v1617_v17 = vld [vmem:[#allocation8 + $0x204] sm:$0xf0]  ;;  %v1882_v19 = vld [vmem:[#allocation8 + $0x10c] sm:$0xf] }
  0x39   :  { %918 = vmatpush.bf16.msrb.mxu2 %v1580_v32  ;;  %v1912_v15 = vld [vmem:[#allocation8 + $0x1fc] sm:$0xf]  ;;  %v1428_v16 = vor.u32 %v1864_v13, %v1425_v14  ;;  %v1497_v20 = vld [vmem:[#allocation8 + $0x114] sm:$0xf0]  ;;  %v1925_v23 = vld [vmem:[#allocation8 + $0x260] sm:$0xf0] }
  0x3a   :  { %v1620_v18 = vor.u32 %v1912_v15, %v1617_v17  ;;  %v1500_v21 = vor.u32 %v1882_v19, %v1497_v20  ;;  %v1663_v22 = vld [vmem:[#allocation8 + $0x258] sm:$0xf]  ;;  %v1861_v26 = vld [vmem:[#allocation8 + $0x64] sm:$0xf]  ;;  %v1413_v27 = vld [vmem:[#allocation8 + $0x6c] sm:$0xf0] }
  0x3b   :  { %891 = vmatpush.bf16.msra.mxu0 %v1376_v42  ;;  %931 = vmatpush.bf16.msra.mxu3 %v1688_v48  ;;  %v1664_v25 = vor.u32 %v1925_v23, %v1663_v22  ;;  %v1909_v28 = vld [vmem:[#allocation8 + $0x1e4] sm:$0xf]  ;;  %v1416_v29 = vor.u32 %v1861_v26, %v1413_v27  ;;  %v1605_v30 = vld [vmem:[#allocation8 + $0x1ec] sm:$0xf0]  ;;  %v1879_v32 = vld [vmem:[#allocation8 + $0xf4] sm:$0xf] }
  0x3c   :  { %905 = vmatpush.bf16.msrb.mxu1 %v1472_v36  ;;  %v1608_v31 = vor.u32 %v1909_v28, %v1605_v30  ;;  %v1485_v33 = vld [vmem:[#allocation8 + $0xfc] sm:$0xf0]  ;;  %v1922_v36 = vld [vmem:[#allocation8 + $0x248] sm:$0xf0]  ;;  %v1401_v39 = vld [vmem:[#allocation8 + $0x54] sm:$0xf0] }
  0x3d   :  { %919 = vmatpush.bf16.msrb.mxu2 %v1568_v45  ;;  %v1488_v34 = vor.u32 %v1879_v32, %v1485_v33  ;;  %v1651_v35 = vld [vmem:[#allocation8 + $0x240] sm:$0xf]  ;;  %v1858_v38 = vld [vmem:[#allocation8 + $0x4c] sm:$0xf]  ;;  %v1593_v41 = vld [vmem:[#allocation8 + $0x1d4] sm:$0xf0] }
  0x3e   :  { %v1652_v37 = vor.u32 %v1922_v36, %v1651_v35  ;;  %v1906_v40 = vld [vmem:[#allocation8 + $0x1cc] sm:$0xf]  ;;  %v1404_v24 = vor.u32 %v1858_v38, %v1401_v39  ;;  %v1737_v43 = vld [vmem:[#allocation8 + $0x2f4] sm:$0xf0]  ;;  %v1876_v46 = vld [vmem:[#allocation8 + $0xdc] sm:$0xf] }
  0x3f   :  { %892 = vmatpush.bf16.msra.mxu0 %v1364_v53  ;;  %932 = vmatpush.bf16.msra.mxu3 %v1676_v12  ;;  %v1942_v42 = vld [vmem:[#allocation8 + $0x2ec] sm:$0xf]  ;;  %v1596_v44 = vor.u32 %v1906_v40, %v1593_v41  ;;  %v1473_v47 = vld [vmem:[#allocation8 + $0xe4] sm:$0xf0]  ;;  %v1389_v50 = vld [vmem:[#allocation8 + $0x3c] sm:$0xf0] }
  0x40   :  { %906 = vmatpush.bf16.msrb.mxu1 %v1460_v49  ;;  %v1740_v45 = vor.u32 %v1942_v42, %v1737_v43  ;;  %v1476_v48 = vor.u32 %v1876_v46, %v1473_v47  ;;  %v1855_v49 = vld [vmem:[#allocation8 + $0x34] sm:$0xf]  ;;  %v1581_v53 = vld [vmem:[#allocation8 + $0x1bc] sm:$0xf0]  ;;  %v1852_v61 = vld [vmem:[#allocation8 + $0x1c] sm:$0xf] }
  0x41   :  { %920 = vmatpush.bf16.msrb.mxu2 %v1556_v59  ;;  %v1903_v51 = vld [vmem:[#allocation8 + $0x1b4] sm:$0xf]  ;;  %v1725_v55 = vld [vmem:[#allocation8 + $0x2dc] sm:$0xf0]  ;;  %v1461_v59 = vld [vmem:[#allocation8 + $0xcc] sm:$0xf0] }
  0x42   :  { %v1939_v54 = vld [vmem:[#allocation8 + $0x2d4] sm:$0xf]  ;;  %v1584_v56 = vor.u32 %v1903_v51, %v1581_v53  ;;  %v1569_v1 = vld [vmem:[#allocation8 + $0x1a4] sm:$0xf0]  ;;  %v1936_v2 = vld [vmem:[#allocation8 + $0x2bc] sm:$0xf] }
  0x43   :  { %941 = vmatpush.bf16.msrb.mxu0 %v1452_v58  ;;  %933 = vmatpush.bf16.msra.mxu3 %v1664_v25  ;;  %v1728_v57 = vor.u32 %v1939_v54, %v1725_v55  ;;  %v1873_v58 = vld [vmem:[#allocation8 + $0xc4] sm:$0xf]  ;;  %v1713_v3 = vld [vmem:[#allocation8 + $0x2c4] sm:$0xf0]  ;;  %v1365_v7 = vld [vmem:[#allocation8 + $0xc] sm:$0xf0] }
  0x44   :  { %955 = vmatpush.bf16.msra.mxu1 %v1548_v52  ;;  %v1392_v52 = vor.u32 %v1855_v49, %v1389_v50  ;;  %v1464_v60 = vor.u32 %v1873_v58, %v1461_v59  ;;  %v1897_v8 = vld [vmem:[#allocation8 + $0x184] sm:$0xf]  ;;  %v1557_v10 = vld [vmem:[#allocation8 + $0x18c] sm:$0xf0]  ;;  %v1930_v15 = vld [vmem:[#allocation8 + $0x28c] sm:$0xf] }
  0x45   :  { %969 = vmatpush.bf16.msra.mxu2 %v1644_v62  ;;  %v1377_v62 = vld [vmem:[#allocation8 + $0x24] sm:$0xf0]  ;;  %v1933_v11 = vld [vmem:[#allocation8 + $0x2a4] sm:$0xf]  ;;  %v1701_v12 = vld [vmem:[#allocation8 + $0x2ac] sm:$0xf0]  ;;  %v1560_v13 = vor.u32 %v1897_v8, %v1557_v10 }
  0x46   :  { %v1380_v0 = vor.u32 %v1852_v61, %v1377_v62  ;;  %v1704_v14 = vor.u32 %v1933_v11, %v1701_v12  ;;  %v1677_v19 = vld [vmem:[#allocation8 + $0x27c] sm:$0xf0]  ;;  %v1665_v22 = vld [vmem:[#allocation8 + $0x264] sm:$0xf0]  ;;  %v2223_v25 = vld [vmem:[#allocation7] sm:$0xf] }
  0x47   :  { %942 = vmatpush.bf16.msrb.mxu0 %v1440_v4  ;;  %934 = vmatpush.bf16.msra.mxu3 %v1652_v37  ;;  %v118_v27 = vperm.slane %v2223_v25, 1  ;;  %v1921_v28 = vld [vmem:[#allocation8 + $0x244] sm:$0xf]  ;;  %v117_v35 = vperm.slane %v2223_v25, 0  ;;  %v1551_v39 = vld [vmem:[#allocation8 + $0x170] sm:$0xf] }
  0x48   :  { %956 = vmatpush.bf16.msra.mxu1 %v1536_v63  ;;  %v1900_v63 = vld [vmem:[#allocation8 + $0x19c] sm:$0xf]  ;;  %v1539_v46 = vld [vmem:[#allocation8 + $0x158] sm:$0xf]  ;;  %v1893_v47 = vld [vmem:[#allocation8 + $0x160] sm:$0xf0] }
  0x49   :  { %970 = vmatpush.bf16.msra.mxu2 %v1632_v5  ;;  %v1572_v4 = vor.u32 %v1900_v63, %v1569_v1  ;;  %v1716_v5 = vor.u32 %v1936_v2, %v1713_v3  ;;  %v1896_v40 = vld [vmem:[#allocation8 + $0x178] sm:$0xf0]  ;;  %v1455_v50 = vld [vmem:[#allocation8 + $0xb0] sm:$0xf]  ;;  %v1540_v58 = vor.u32 %v1893_v47, %v1539_v46  ;;  %v1527_v61 = vld [vmem:[#allocation8 + $0x140] sm:$0xf] }
  0x4a   :  { %v1552_v43 = vor.u32 %v1896_v40, %v1551_v39  ;;  %v1872_v51 = vld [vmem:[#allocation8 + $0xb8] sm:$0xf0]  ;;  %v1647_v54 = vld [vmem:[#allocation8 + $0x230] sm:$0xf]  ;;  %v1890_v62 = vld [vmem:[#allocation8 + $0x148] sm:$0xf0] }
  0x4b   :  { %943 = vmatpush.bf16.msrb.mxu0 %v1428_v16  ;;  %983 = vmatpush.bf16.msrb.mxu3 %v1740_v45  ;;  %v1689_v16 = vld [vmem:[#allocation8 + $0x294] sm:$0xf0]  ;;  %v1920_v55 = vld [vmem:[#allocation8 + $0x238] sm:$0xf0]  ;;  %v1869_v2 = vld [vmem:[#allocation8 + $0xa0] sm:$0xf0] }
  0x4c   :  { %957 = vmatpush.bf16.msra.mxu1 %v1524_v6  ;;  %v1849_v6 = vld [vmem:[#allocation8 + $0x4] sm:$0xf]  ;;  %v1692_v17 = vor.u32 %v1930_v15, %v1689_v16  ;;  %v1443_v1 = vld [vmem:[#allocation8 + $0x98] sm:$0xf]  ;;  %v1887_v10 = vld [vmem:[#allocation8 + $0x130] sm:$0xf0] }
  0x4d   :  { %971 = vmatpush.bf16.msra.mxu2 %v1620_v18  ;;  %v1927_v18 = vld [vmem:[#allocation8 + $0x274] sm:$0xf]  ;;  %v1444_v8 = vor.u32 %v1869_v2, %v1443_v1  ;;  %v1431_v12 = vld [vmem:[#allocation8 + $0x80] sm:$0xf]  ;;  %v1914_v15 = vld [vmem:[#allocation8 + $0x208] sm:$0xf0] }
  0x4e   :  { %v1680_v20 = vor.u32 %v1927_v18, %v1677_v19  ;;  %v120_v16 = vperm.slane %v2223_v25, 3  ;;  %v1503_v19 = vld [vmem:[#allocation8 + $0x110] sm:$0xf]  ;;  %v1575_v1 = vld [vmem:[#allocation8 + $0x1a0] sm:$0xf]  ;;  %s1308_s10 = sshll.u32 %s2154_s9, 4  ;;  %s1309_s10 = int_to_ptr.vmem [resolvable:$true] %s1308_s10 }
  0x4f   :  { %944 = vmatpush.bf16.msrb.mxu0 %v1416_v29  ;;  %984 = vmatpush.bf16.msrb.mxu3 %v1728_v57  ;;  %v1653_v29 = vld [vmem:[#allocation8 + $0x24c] sm:$0xf0]  ;;  %v1902_v2 = vld [vmem:[#allocation8 + $0x1a8] sm:$0xf0]  ;;  %s1310_s13 = sshll.u32 %s2273_s7, 4  ;;  %s1311_s13 = int_to_ptr.hbm [resolvable:$true] %s1310_s13 }
  0x50   :  { %958 = vmatpush.bf16.msra.mxu1 %v1512_v9  ;;  %v1368_v9 = vor.u32 %v1849_v6, %v1365_v7  ;;  %v1656_v30 = vor.u32 %v1921_v28, %v1653_v29  ;;  %v1528_v6 = vor.u32 %v1890_v62, %v1527_v61  ;;  %v1383_v61 = vld [vmem:[#allocation8 + $0x20] sm:$0xf] }
  0x51   :  { %972 = vmatpush.bf16.msra.mxu2 %v1608_v31 }
  0x53   :  { %945 = vmatpush.bf16.msrb.mxu0 %v1404_v24  ;;  %985 = vmatpush.bf16.msrb.mxu3 %v1716_v5  ;;  %v1917_v5 = vld [vmem:[#allocation8 + $0x220] sm:$0xf0] }
  0x54   :  { %959 = vmatpush.bf16.msra.mxu1 %v1500_v21  ;;  %v1924_v21 = vld [vmem:[#allocation8 + $0x25c] sm:$0xf] }
  0x55   :  { %973 = vmatpush.bf16.msra.mxu2 %v1596_v44  ;;  %v1668_v23 = vor.u32 %v1924_v21, %v1665_v22  ;;  %v1419_v22 = vld [vmem:[#allocation8 + $0x68] sm:$0xf] }
  0x57   :  { %946 = vmatpush.bf16.msrb.mxu0 %v1392_v52  ;;  %986 = vmatpush.bf16.msrb.mxu3 %v1704_v14  ;;  %v1623_v14 = vld [vmem:[#allocation8 + $0x200] sm:$0xf] }
  0x58   :  { %960 = vmatpush.bf16.msra.mxu1 %v1488_v34  ;;  %v119_v34 = vperm.slane %v2223_v25, 2  ;;  %v1624_v21 = vor.u32 %v1914_v15, %v1623_v14  ;;  %v1881_v25 = vld [vmem:[#allocation8 + $0x100] sm:$0xf0]  ;;  %v1707_v14 = vld [vmem:[#allocation8 + $0x2a8] sm:$0xf] }
  0x59   :  { %974 = vmatpush.bf16.msra.mxu2 %v1584_v56  ;;  %v1935_v15 = vld [vmem:[#allocation8 + $0x2b0] sm:$0xf0] }
  0x5b   :  { %947 = vmatpush.bf16.msrb.mxu0 %v1380_v0  ;;  %987 = vmatpush.bf16.msrb.mxu3 %v1692_v17  ;;  %v1648_v0 = vor.u32 %v1920_v55, %v1647_v54  ;;  %v1731_v55 = vld [vmem:[#allocation8 + $0x2d8] sm:$0xf] }
  0x5c   :  { %961 = vmatpush.bf16.msra.mxu1 %v1476_v48 }
  0x5d   :  { %975 = vmatpush.bf16.msra.mxu2 %v1572_v4  ;;  %v1635_v4 = vld [vmem:[#allocation8 + $0x218] sm:$0xf] }
  0x5e   :  { %v1636_v11 = vor.u32 %v1917_v5, %v1635_v4  ;;  %v1719_v5 = vld [vmem:[#allocation8 + $0x2c0] sm:$0xf] }
  0x5f   :  { %948 = vmatpush.bf16.msrb.mxu0 %v1368_v9  ;;  %988 = vmatpush.bf16.msrb.mxu3 %v1680_v20  ;;  %v1515_v9 = vld [vmem:[#allocation8 + $0x128] sm:$0xf]  ;;  %v1884_v20 = vld [vmem:[#allocation8 + $0x118] sm:$0xf0] }
  0x60   :  { %962 = vmatpush.bf16.msra.mxu1 %v1464_v60  ;;  %v1456_v60 = vor.u32 %v1872_v51, %v1455_v50  ;;  %v1516_v17 = vor.u32 %v1887_v10, %v1515_v9  ;;  %v1504_v29 = vor.u32 %v1884_v20, %v1503_v19  ;;  %v1857_v51 = vld [vmem:[#allocation8 + $0x40] sm:$0xf0]  ;;  %v1371_v9 = vld [vmem:[#allocation8 + $0x8] sm:$0xf]  ;;  %v1695_v19 = vld [vmem:[#allocation8 + $0x290] sm:$0xf] }
  0x61   :  { %976 = vmatpush.bf16.msra.mxu2 %v1560_v13  ;;  %v1866_v13 = vld [vmem:[#allocation8 + $0x88] sm:$0xf0]  ;;  %v1932_v20 = vld [vmem:[#allocation8 + $0x298] sm:$0xf0] }
  0x62   :  { %v1432_v18 = vor.u32 %v1866_v13, %v1431_v12  ;;  %v1563_v12 = vld [vmem:[#allocation8 + $0x188] sm:$0xf]  ;;  %v1899_v13 = vld [vmem:[#allocation8 + $0x190] sm:$0xf0] }
  0x63   :  { %989 = vmatpush.bf16.msrb.mxu3 %v1668_v23  ;;  %v1863_v23 = vld [vmem:[#allocation8 + $0x70] sm:$0xf0] }
  0x67   :  { %990 = vmatpush.bf16.msrb.mxu3 %v1656_v30 }
  0xa2   :  { %v192_v26 = vpop.f32.mrf.mxu1 }
  0xa3   :  { %v193_v31 = vadd.f32 %v192_v26, %v118_v27  ;;  %v1611_v26 = vld [vmem:[#allocation8 + $0x1e8] sm:$0xf] }
  0xa5   :  { %v178_v32 = vpop.f32.mrf.mxu3  ;;  %v226_v37 = vmax.f32 %v193_v31, 0.0  ;;  %v1420_v31 = vor.u32 %v1863_v23, %v1419_v22  ;;  %v1683_v22 = vld [vmem:[#allocation8 + $0x278] sm:$0xf]  ;;  %v1929_v23 = vld [vmem:[#allocation8 + $0x280] sm:$0xf0] }
  0xa6   :  { %v179_v42 = vadd.f32 %v178_v32, %v117_v35  ;;  %v1491_v32 = vld [vmem:[#allocation8 + $0xf8] sm:$0xf] }
  0xa7   :  { %v206_v33 = vpop.f32.mrf.mxu2 }
  0xa8   :  { %v207_v24 = vadd.f32 %v206_v33, %v119_v34  ;;  %v225_v56 = vmax.f32 %v179_v42, 0.0  ;;  %v1944_v42 = vld [vmem:[#allocation8 + $0x2f8] sm:$0xf0] }
  0xaa   :  { %v194_v36 = vpop.f32.mrf.mxu1  ;;  %v227_v52 = vmax.f32 %v207_v24, 0.0  ;;  %v1492_v24 = vor.u32 %v1881_v25, %v1491_v32  ;;  %v1952_v32 = vld [vmem:[#allocation10 + $0x38] sm:$0xff]  ;;  %v1951_v25 = vld [vmem:[#allocation10 + $0x30] sm:$0xff] }
  0xab   :  { %v195_v38 = vadd.f32 %v194_v36, %v118_v27  ;;  %v1911_v27 = vld [vmem:[#allocation8 + $0x1f0] sm:$0xf0]  ;;  %v1860_v36 = vld [vmem:[#allocation8 + $0x58] sm:$0xf0] }
  0xad   :  { %v230_v41 = vmax.f32 %v195_v38, 0.0  ;;  %v180_v45 = vpop.f32.mrf.mxu3  ;;  %v1908_v38 = vld [vmem:[#allocation8 + $0x1d8] sm:$0xf0] }
  0xae   :  { %v181_v48 = vadd.f32 %v180_v45, %v117_v35  ;;  %v1407_v35 = vld [vmem:[#allocation8 + $0x50] sm:$0xf]  ;;  %v1878_v45 = vld [vmem:[#allocation8 + $0xe8] sm:$0xf0] }
  0xaf   :  { %v2228_v44 = vpack.c.bf16 %v230_v41, %v226_v37  ;;  %v208_v49 = vpop.f32.mrf.mxu2  ;;  %v1599_v37 = vld [vmem:[#allocation8 + $0x1d0] sm:$0xf]  ;;  %v1408_v47 = vor.u32 %v1860_v36, %v1407_v35 }
  0xb0   :  { %v209_v53 = vadd.f32 %v208_v49, %v119_v34  ;;  %v229_v57 = vmax.f32 %v181_v48, 0.0  ;;  %v1612_v34 = vor.u32 %v1911_v27, %v1611_v26  ;;  %v1743_v41 = vld [vmem:[#allocation8 + $0x2f0] sm:$0xf]  ;;  %v1600_v48 = vor.u32 %v1908_v38, %v1599_v37  ;;  %v1395_v49 = vld [vmem:[#allocation8 + $0x38] sm:$0xf]  ;;  %v1946_v37 = vld [vmem:[#allocation10 + $0x8] sm:$0xff] }
  0xb1   :  { %907 = vmatmul.bf16.vlgmr.msrb.gmra.mxu1 %v2228_v44  ;;  %v1744_v50 = vor.u32 %v1944_v42, %v1743_v41  ;;  %v1684_v26 = vor.u32 %v1929_v23, %v1683_v22  ;;  %v1671_v27 = vld [vmem:[#allocation8 + $0x260] sm:$0xf]  ;;  %v1947_v35 = vld [vmem:[#allocation10 + $0x10] sm:$0xff]  ;;  %v1958_v38 = vld [vmem:[#allocation10 + $0x68] sm:$0xff] }
  0xb2   :  { %1011 = vmatpush.bf16.msrb.mxu1 %v1552_v43  ;;  %v231_v59 = vmax.f32 %v209_v53, 0.0  ;;  %v2231_v63 = vpack.c.bf16 %v229_v57, %v225_v56  ;;  %v1479_v43 = vld [vmem:[#allocation8 + $0xe0] sm:$0xf]  ;;  %v1905_v53 = vld [vmem:[#allocation8 + $0x1c0] sm:$0xf0]  ;;  %v1959_v36 = vld [vmem:[#allocation10 + $0x70] sm:$0xff] }
  0xb3   :  { %v1480_v54 = vor.u32 %v1878_v45, %v1479_v43  ;;  %v1941_v56 = vld [vmem:[#allocation8 + $0x2e0] sm:$0xf0]  ;;  %v1467_v57 = vld [vmem:[#allocation8 + $0xc8] sm:$0xf]  ;;  %v1956_v41 = vld [vmem:[#allocation10 + $0x58] sm:$0xff] }
  0xb4   :  { %v2233_v3 = vpack.c.bf16 %v231_v59, %v227_v52  ;;  %893 = vmatmul.bf16.vlgmr.msra.gmra.mxu0 %v2231_v63  ;;  %v1587_v52 = vld [vmem:[#allocation8 + $0x1b8] sm:$0xf]  ;;  %v1396_v59 = vor.u32 %v1857_v51, %v1395_v49  ;;  %v1732_v62 = vor.u32 %v1941_v56, %v1731_v55  ;;  %v1966_v51 = vld [vmem:[#allocation10 + $0xa8] sm:$0xff] }
  0xb5   :  { %v220_v7 = vpop.f32.mrf.mxu3  ;;  %997 = vmatpush.bf16.msra.mxu0 %v1456_v60  ;;  %v1588_v60 = vor.u32 %v1905_v53, %v1587_v52  ;;  %v1968_v42 = vld [vmem:[#allocation10 + $0xb8] sm:$0xff]  ;;  %v1953_v53 = vld [vmem:[#allocation10 + $0x40] sm:$0xff] }
  0xb6   :  { %1012 = vmatpush.bf16.msrb.mxu1 %v1540_v58  ;;  %921 = vmatmul.bf16.vlgmr.msrb.gmra.mxu2 %v2233_v3  ;;  %v221_v28 = vadd.f32 %v220_v7, %v120_v16  ;;  %v1875_v58 = vld [vmem:[#allocation8 + $0xd0] sm:$0xf0] }
  0xb7   :  { %1025 = vmatpush.bf16.msrb.mxu2 %v1648_v0  ;;  %v1854_v0 = vld [vmem:[#allocation8 + $0x28] sm:$0xf0]  ;;  %v1468_v4 = vor.u32 %v1875_v58, %v1467_v57 }
  0xb8   :  { %v228_v39 = vmax.f32 %v221_v28, 0.0  ;;  %v1384_v7 = vor.u32 %v1854_v0, %v1383_v61  ;;  %v1926_v28 = vld [vmem:[#allocation8 + $0x268] sm:$0xf0]  ;;  %v1963_v0 = vld [vmem:[#allocation10 + $0x90] sm:$0xff] }
  0xb9   :  { %998 = vmatpush.bf16.msra.mxu0 %v1444_v8  ;;  %v1576_v8 = vor.u32 %v1902_v2, %v1575_v1 }
  0xba   :  { %1013 = vmatpush.bf16.msrb.mxu1 %v1528_v6  ;;  %v1938_v6 = vld [vmem:[#allocation8 + $0x2c8] sm:$0xf0] }
  0xbb   :  { %1026 = vmatpush.bf16.msrb.mxu2 %v1636_v11  ;;  %v1720_v10 = vor.u32 %v1938_v6, %v1719_v5  ;;  %v1851_v11 = vld [vmem:[#allocation8 + $0x10] sm:$0xf0] }
  0xbd   :  { %v222_v30 = vpop.f32.mrf.mxu3  ;;  %999 = vmatpush.bf16.msra.mxu0 %v1432_v18  ;;  %v1708_v18 = vor.u32 %v1935_v15, %v1707_v14  ;;  %v1961_v15 = vld [vmem:[#allocation10 + $0x80] sm:$0xff] }
  0xbe   :  { %1014 = vmatpush.bf16.msrb.mxu1 %v1516_v17  ;;  %v223_v33 = vadd.f32 %v222_v30, %v120_v16  ;;  %v1372_v16 = vor.u32 %v1851_v11, %v1371_v9  ;;  %v1564_v17 = vor.u32 %v1899_v13, %v1563_v12  ;;  %v1923_v30 = vld [vmem:[#allocation8 + $0x250] sm:$0xf0]  ;;  %v1962_v9 = vld [vmem:[#allocation10 + $0x88] sm:$0xff] }
  0xbf   :  { %1027 = vmatpush.bf16.msrb.mxu2 %v1624_v21  ;;  %v1696_v21 = vor.u32 %v1932_v20, %v1695_v19 }
  0xc0   :  { %v232_v40 = vmax.f32 %v223_v33, 0.0  ;;  %v1948_v33 = vld [vmem:[#allocation10 + $0x18] sm:$0xff] }
  0xc1   :  { %963 = vmatmul.bf16.vlgmr.msra.gmra.mxu1 %v2228_v44  ;;  %1000 = vmatpush.bf16.msra.mxu0 %v1420_v31 }
  0xc2   :  { %1015 = vmatpush.bf16.msrb.mxu1 %v1504_v29  ;;  %v2239_v46 = vpack.c.bf16 %v232_v40, %v228_v39  ;;  %v1659_v29 = vld [vmem:[#allocation8 + $0x248] sm:$0xf]  ;;  %v1945_v39 = vld [vmem:[#allocation10] sm:$0xff] }
  0xc3   :  { %1028 = vmatpush.bf16.msrb.mxu2 %v1612_v34  ;;  %v1660_v31 = vor.u32 %v1923_v30, %v1659_v29  ;;  %v1960_v34 = vld [vmem:[#allocation10 + $0x78] sm:$0xff]  ;;  %v1957_v40 = vld [vmem:[#allocation10 + $0x60] sm:$0xff] }
  0xc4   :  { %935 = vmatmul.bf16.vlgmr.msra.gmra.mxu3 %v2239_v46  ;;  %949 = vmatmul.bf16.vlgmr.msrb.gmra.mxu0 %v2231_v63 }
  0xc5   :  { %1001 = vmatpush.bf16.msra.mxu0 %v1408_v47  ;;  %1039 = vmatpush.bf16.msra.mxu3 %v1744_v50  ;;  %v1967_v47 = vld [vmem:[#allocation10 + $0xb0] sm:$0xff]  ;;  %v1954_v50 = vld [vmem:[#allocation10 + $0x48] sm:$0xff] }
  0xc6   :  { %1016 = vmatpush.bf16.msrb.mxu1 %v1492_v24  ;;  %977 = vmatmul.bf16.vlgmr.msra.gmra.mxu2 %v2233_v3 }
  0xc7   :  { %1029 = vmatpush.bf16.msrb.mxu2 %v1600_v48  ;;  %v2252_v48 = vld [vmem:[%s2270_s4] sm:$0x7] }
  0xc8   :  { %v367_v52 = vperm.slane %v2252_v48, 0  ;;  %v368_v11 = vperm.slane %v2252_v48, 1 }
  0xc9   :  { %1002 = vmatpush.bf16.msra.mxu0 %v1396_v59  ;;  %1040 = vmatpush.bf16.msra.mxu3 %v1732_v62  ;;  %v1964_v59 = vld [vmem:[#allocation10 + $0x98] sm:$0xff] }
  0xca   :  { %1017 = vmatpush.bf16.msrb.mxu1 %v1480_v54  ;;  %v1965_v54 = vld [vmem:[#allocation10 + $0xa0] sm:$0xff] }
  0xcb   :  { %1030 = vmatpush.bf16.msrb.mxu2 %v1588_v60 }
  0xcd   :  { %1003 = vmatpush.bf16.msra.mxu0 %v1384_v7  ;;  %1041 = vmatpush.bf16.msra.mxu3 %v1720_v10 }
  0xce   :  { %1018 = vmatpush.bf16.msrb.mxu1 %v1468_v4 }
  0xcf   :  { %1031 = vmatpush.bf16.msrb.mxu2 %v1576_v8 }
  0xd1   :  { %1019 = vmatmul.bf16.vlgmr.msrb.gmra.mxu1 %v2228_v44  ;;  %1004 = vmatpush.bf16.msra.mxu0 %v1372_v16  ;;  %v1672_v44 = vor.u32 %v1926_v28, %v1671_v27 }
  0xd2   :  { %1042 = vmatpush.bf16.msra.mxu3 %v1708_v18  ;;  %1272 = vmatpush.bf16.msra.mxu1 %v1960_v34 }
  0xd3   :  { %1032 = vmatpush.bf16.msrb.mxu2 %v1564_v17 }
  0xd4   :  { %991 = vmatmul.bf16.vlgmr.msrb.gmra.mxu3 %v2239_v46  ;;  %1005 = vmatmul.bf16.vlgmr.msra.gmra.mxu0 %v2231_v63  ;;  %v1950_v63 = vld [vmem:[#allocation10 + $0x28] sm:$0xff] }
  0xd5   :  { %1258 = vmatpush.bf16.msrb.mxu0 %v1952_v32 }
  0xd6   :  { %1033 = vmatmul.bf16.vlgmr.msrb.gmra.mxu2 %v2233_v3  ;;  %1043 = vmatpush.bf16.msra.mxu3 %v1696_v21  ;;  %v1949_v3 = vld [vmem:[#allocation10 + $0x20] sm:$0xff] }
  0xd7   :  { %1273 = vmatpush.bf16.msra.mxu1 %v1959_v36  ;;  %1286 = vmatpush.bf16.msra.mxu2 %v1968_v42 }
  0xd9   :  { %1259 = vmatpush.bf16.msrb.mxu0 %v1951_v25 }
  0xda   :  { %1044 = vmatpush.bf16.msra.mxu3 %v1684_v26 }
  0xdb   :  { %1274 = vmatpush.bf16.msra.mxu1 %v1958_v38  ;;  %1287 = vmatpush.bf16.msra.mxu2 %v1967_v47 }
  0xdd   :  { %1260 = vmatpush.bf16.msrb.mxu0 %v1950_v63 }
  0xde   :  { %1045 = vmatpush.bf16.msra.mxu3 %v1672_v44 }
  0xdf   :  { %1275 = vmatpush.bf16.msra.mxu1 %v1957_v40  ;;  %1288 = vmatpush.bf16.msra.mxu2 %v1966_v51 }
  0xe1   :  { %1261 = vmatpush.bf16.msrb.mxu0 %v1949_v3  ;;  %v369_v3 = vperm.slane %v2252_v48, 2 }
  0xe2   :  { %1046 = vmatpush.bf16.msra.mxu3 %v1660_v31 }
  0xe3   :  { %1276 = vmatpush.bf16.msra.mxu1 %v1956_v41  ;;  %1289 = vmatpush.bf16.msra.mxu2 %v1965_v54 }
  0xe5   :  { %1047 = vmatmul.bf16.vlgmr.msra.gmra.mxu3 %v2239_v46  ;;  %1262 = vmatpush.bf16.msrb.mxu0 %v1948_v33  ;;  %v1955_v46 = vld [vmem:[#allocation10 + $0x50] sm:$0xff] }
  0xe7   :  { %1277 = vmatpush.bf16.msra.mxu1 %v1955_v46  ;;  %1290 = vmatpush.bf16.msra.mxu2 %v1964_v59 }
  0xe9   :  { %1263 = vmatpush.bf16.msrb.mxu0 %v1947_v35 }
  0xeb   :  { %1278 = vmatpush.bf16.msra.mxu1 %v1954_v50  ;;  %1291 = vmatpush.bf16.msra.mxu2 %v1963_v0 }
  0xed   :  { %1264 = vmatpush.bf16.msrb.mxu0 %v1946_v37 }
  0xef   :  { %1279 = vmatpush.bf16.msra.mxu1 %v1953_v53  ;;  %1292 = vmatpush.bf16.msra.mxu2 %v1962_v9  ;;  %v1988_v53 = vld [vmem:[%s2272_s6] ss:$0 sm:$0xff] }
  0xf1   :  { %1265 = vmatpush.bf16.msrb.mxu0 %v1945_v39 }
  0xf3   :  { %1293 = vmatpush.bf16.msra.mxu2 %v1961_v15 }
 0x12e   :  { %v908_v43 = vpop.f32.mrf.mxu1 }
 0x131   :  { %v894_v24 = vpop.f32.mrf.mxu0 }
 0x132   :  { %v895_v57 = vadd.f32 %v894_v24, %v367_v52 }
 0x134   :  { %v909_v62 = vadd.f32 %v908_v43, %v895_v57 }
 0x136   :  { %v910_v55 = vpop.f32.mrf.mxu1 }
 0x139   :  { %v922_v45 = vpop.f32.mrf.mxu2  ;;  %v896_v49 = vpop.f32.mrf.mxu0 }
 0x13a   :  { %v897_v60 = vadd.f32 %v896_v49, %v367_v52  ;;  %v923_v1 = vadd.f32 %v922_v45, %v909_v62 }
 0x13c   :  { %v911_v2 = vadd.f32 %v910_v55, %v897_v60 }
 0x13e   :  { %v964_v4 = vpop.f32.mrf.mxu1 }
 0x141   :  { %v924_v56 = vpop.f32.mrf.mxu2  ;;  %v950_v61 = vpop.f32.mrf.mxu0 }
 0x142   :  { %v925_v5 = vadd.f32 %v924_v56, %v911_v2  ;;  %v951_v17 = vadd.f32 %v950_v61, %v368_v11 }
 0x144   :  { %v965_v22 = vadd.f32 %v964_v4, %v951_v17 }
 0x146   :  { %v966_v20 = vpop.f32.mrf.mxu1 }
 0x147   :  { %v936_v58 = vpop.f32.mrf.mxu3 }
 0x148   :  { %v937_v6 = vadd.f32 %v936_v58, %v923_v1 }
 0x149   :  { %v978_v7 = vpop.f32.mrf.mxu2  ;;  %v952_v14 = vpop.f32.mrf.mxu0 }
 0x14a   :  { %v1053_v12 = vmax.f32 %v937_v6, 0.0  ;;  %v953_v19 = vadd.f32 %v952_v14, %v368_v11  ;;  %v979_v23 = vadd.f32 %v978_v7, %v965_v22 }
 0x14c   :  { %v967_v26 = vadd.f32 %v966_v20, %v953_v19 }
 0x14e   :  { %v1020_v25 = vpop.f32.mrf.mxu1 }
 0x14f   :  { %v938_v8 = vpop.f32.mrf.mxu3 }
 0x150   :  { %v939_v10 = vadd.f32 %v938_v8, %v925_v5 }
 0x151   :  { %v980_v21 = vpop.f32.mrf.mxu2  ;;  %v1006_v27 = vpop.f32.mrf.mxu0 }
 0x152   :  { %v1056_v13 = vmax.f32 %v939_v10, 0.0  ;;  %v981_v28 = vadd.f32 %v980_v21, %v967_v26  ;;  %v1007_v35 = vadd.f32 %v1006_v27, %v369_v3 }
 0x154   :  { %v1059_v16 = vpack.c.bf16 %v1056_v13, %v1053_v12  ;;  %v1021_v38 = vadd.f32 %v1020_v25, %v1007_v35 }
 0x156   :  { %1266 = vmatmul.bf16.vlgmr.msrb.gmra.mxu0 %v1059_v16  ;;  %v1022_v39 = vpop.f32.mrf.mxu1 }
 0x157   :  { %v992_v18 = vpop.f32.mrf.mxu3 }
 0x158   :  { %v993_v44 = vadd.f32 %v992_v18, %v979_v23 }
 0x159   :  { %v1034_v63 = vpop.f32.mrf.mxu2  ;;  %v1008_v34 = vpop.f32.mrf.mxu0 }
 0x15a   :  { %v1054_v31 = vmax.f32 %v993_v44, 0.0  ;;  %v1009_v37 = vadd.f32 %v1008_v34, %v369_v3  ;;  %v1035_v24 = vadd.f32 %v1034_v63, %v1021_v38 }
 0x15c   :  { %v1023_v41 = vadd.f32 %v1022_v39, %v1009_v37 }
 0x15f   :  { %v994_v29 = vpop.f32.mrf.mxu3 }
 0x160   :  { %v995_v30 = vadd.f32 %v994_v29, %v981_v28 }
 0x161   :  { %v1036_v40 = vpop.f32.mrf.mxu2 }
 0x162   :  { %v1057_v32 = vmax.f32 %v995_v30, 0.0  ;;  %v1037_v42 = vadd.f32 %v1036_v40, %v1023_v41 }
 0x164   :  { %v1060_v33 = vpack.c.bf16 %v1057_v32, %v1054_v31 }
 0x166   :  { %1280 = vmatmul.bf16.vlgmr.msra.gmra.mxu1 %v1060_v33 }
 0x168   :  { %v1048_v36 = vpop.f32.mrf.mxu3 }
 0x169   :  { %v1049_v43 = vadd.f32 %v1048_v36, %v1035_v24 }
 0x16b   :  { %v1055_v47 = vmax.f32 %v1049_v43, 0.0 }
 0x170   :  { %v1050_v45 = vpop.f32.mrf.mxu3 }
 0x171   :  { %v1051_v46 = vadd.f32 %v1050_v45, %v1037_v42 }
 0x173   :  { %v1058_v49 = vmax.f32 %v1051_v46, 0.0 }
 0x175   :  { %v1061_v50 = vpack.c.bf16 %v1058_v49, %v1055_v47 }
 0x177   :  { %1294 = vmatmul.bf16.vlgmr.msra.gmra.mxu2 %v1061_v50 }
 0x1d3   :  { %v1267_v48 = vpop.f32.mrf.mxu0 }
 0x1d4   :  { %v1268_v56 = vadd.f32 %v1988_v53, %v1267_v48 }
 0x1db   :  { %v1269_v54 = vpop.f32.mrf.mxu0 }
 0x1dc   :  { %v1270_v57 = vadd.f32 %v1988_v53, %v1269_v54 }
 0x1e3   :  { %v1281_v51 = vpop.f32.mrf.mxu1 }
 0x1e4   :  { %v1282_v58 = vadd.f32 %v1281_v51, %v1268_v56 }
 0x1eb   :  { %v1283_v55 = vpop.f32.mrf.mxu1 }
 0x1ec   :  { %v1284_v59 = vadd.f32 %v1283_v55, %v1270_v57 }
 0x1fa   :  { %v1295_v52 = vpop.f32.mrf.mxu2 }
 0x1fb   :  { %v1296_v61 = vadd.f32 %v1295_v52, %v1282_v58 }
 0x202   :  { %v1297_v60 = vpop.f32.mrf.mxu2 }
 0x203   :  { %v1298_v62 = vadd.f32 %v1297_v60, %v1284_v59 }
 0x205   :  { %v1972_v0 = vpack.c.bf16 %v1298_v62, %v1296_v61 }
 0x207   :  { %1973 = vst [vmem:[#allocation11] sm:$0xff] %v1972_v0  }
 0x208   :  { %1316 = dma.vmem_to_hbm [thread:$0]  %s1309_s10, 128, %s1311_s13, [#allocation4], %s2152_s29, %s2152_s29, %s2153_s30  }
 0x209   :  { %2139 = dma.done.wait [#allocation4], 128  }
 0x20a   :  { %2140 = vsyncadd [#allocation4], 4294967168 }
 0x20b   :  { %1321 = vsyncpa [#allocation3], 1 }
 0x20c   :  { %1322 = vsyncpa [#allocation6], 1 }
 0x20d   :  { %1323 = vsyncpa [#allocation9], 1 }
 0x20e   :  { %1324 = vsyncpa [#allocation4], 1 }

</bundles_post_ra>
